<compile_context>
chip_gen: v7x
topology: tpu7x:2x2x1
jax: 0.10.0
libtpu: 0.0.40
codegen_flags: <defaults>
</compile_context>

<pallas_src>
import math

import jax
import jax.numpy as jnp
from jax.experimental import pallas as pl
from jax.experimental.pallas import tpu as pltpu

_LANE = 512             # lane-dense last dim (multiple of 128)
_MAX_BLOCK_ROWS = 1024  # 1024 x 512 f32 = 2 MiB/tile; 2 arrays x 2 bufs = 8 MiB VMEM


def _scale_exp_kernel(scale_ref, x_ref, o_ref):
    # scale_ref: (1,) f32 in SMEM; x_ref / o_ref: (block_rows, _LANE) VMEM tiles.
    o_ref[...] = jnp.exp(x_ref[...] * scale_ref[0])


def scale_exp(x: jax.Array, scale: jax.Array) -> jax.Array:
    """Pallas implementation of ScaleExp.forward: exp(x * scale).

    x:     any-rank float array (e.g. NCHW activations).
    scale: shape (1,) float32 parameter (matches nn.Parameter(torch.tensor([v]))).
    """
    orig_shape = x.shape
    total = math.prod(orig_shape) if orig_shape else 1

    # Lane-dense flat layout: (rows, _LANE) with _LANE a large multiple of 128.
    rows = -(-total // _LANE)                              # ceil(total / LANE)
    block_rows = min(_MAX_BLOCK_ROWS, -(-rows // 8) * 8)   # multiple of 8 sublanes
    padded_rows = -(-rows // block_rows) * block_rows      # whole number of blocks
    padded_total = padded_rows * _LANE

    flat = x.reshape(-1)
    if padded_total != total:
        flat = jnp.pad(flat, (0, padded_total - total))
    x2d = flat.reshape(padded_rows, _LANE)

    num_blocks = padded_rows // block_rows

    out2d = pl.pallas_call(
        _scale_exp_kernel,
        out_shape=jax.ShapeDtypeStruct(x2d.shape, x2d.dtype),
        grid=(num_blocks,),
        in_specs=[
            pl.BlockSpec(memory_space=pltpu.SMEM),                # scalar scale param
            pl.BlockSpec((block_rows, _LANE), lambda i: (i, 0)),  # lane-dense tiles
        ],
        out_specs=pl.BlockSpec((block_rows, _LANE), lambda i: (i, 0)),
        compiler_params=pltpu.CompilerParams(
            dimension_semantics=("parallel",),  # shard row-tile axis across TCs (v7x)
        ),
    )(scale, x2d)

    out = out2d.reshape(-1)
    if padded_total != total:
        out = out[:total]
    return out.reshape(orig_shape)


if __name__ == "__main__":
    key = jax.random.PRNGKey(0)

    # Deterministic parameter init, mirroring ScaleExp(init_value=1.0).
    init_value = 1.0
    scale = jnp.array([init_value], dtype=jnp.float32)

    # Small NCHW input consistent with a conv-feature-map consumer.
    x = jax.random.normal(key, (2, 4, 16, 16), dtype=jnp.float32)

    y = jax.block_until_ready(scale_exp(x, scale))
    ref = jnp.exp(x * scale[0])
    assert y.shape == x.shape and y.dtype == x.dtype
    assert jnp.allclose(y, ref, rtol=1e-6, atol=1e-6)

    # Second check that exercises the multi-block + tail-padding path.
    k2 = jax.random.PRNGKey(1)
    x_big = jax.random.normal(k2, (4, 8, 128, 129), dtype=jnp.float32)
    y_big = jax.block_until_ready(scale_exp(x_big, scale))
    ref_big = jnp.exp(x_big * scale[0])
    assert y_big.shape == x_big.shape and y_big.dtype == x_big.dtype
    assert jnp.allclose(y_big, ref_big, rtol=1e-6, atol=1e-6)

    print("KERNEL_OK")
</pallas_src>

<mosaic_0001>
module attributes {stable_mosaic.version = 11 : i64} {
  func.func @_scale_exp_kernel(%arg0: i32, %arg1: memref<1xf32, #tpu.memory_space<smem>>, %arg2: memref<8x512xf32, #tpu.memory_space<vmem>>, %arg3: memref<8x512xf32, #tpu.memory_space<vmem>>) attributes {dimension_semantics = [#tpu.dimension_semantics<parallel>], iteration_bounds = array<i64: 1>, scalar_prefetch = 0 : i64, scratch_operands = 0 : i64, tpu.core_type = #tpu.core_type<tc>, window_params = [{transform_indices = @transform_0, window_bounds = array<i64: 1>}, {transform_indices = @transform_1, window_bounds = array<i64: 8, 512>}, {transform_indices = @transform_2, window_bounds = array<i64: 8, 512>}]} {
    %c0 = arith.constant 0 : index
    %c0_0 = arith.constant 0 : index
    %0 = vector.load %arg2[%c0, %c0_0] : memref<8x512xf32, #tpu.memory_space<vmem>>, vector<8x512xf32>
    %c0_1 = arith.constant 0 : index
    %1 = memref.load %arg1[%c0_1] : memref<1xf32, #tpu.memory_space<smem>>
    %2 = vector.broadcast %1 : f32 to vector<8x512xf32>
    %3 = arith.mulf %0, %2 : vector<8x512xf32>
    %4 = math.exp %3 : vector<8x512xf32>
    %c0_2 = arith.constant 0 : index
    %c0_3 = arith.constant 0 : index
    %5 = vector.load %arg3[%c0_2, %c0_3] : memref<8x512xf32, #tpu.memory_space<vmem>>, vector<8x512xf32>
    tpu.vector_store %arg3[%c0_2, %c0_3], %4 {strides = array<i32>} : memref<8x512xf32, #tpu.memory_space<vmem>>, vector<8x512xf32>,
    return
  }
  func.func @transform_0(%arg0: i32) -> i32 {
    %c0_i32 = arith.constant 0 : i32
    %c0_i32_0 = arith.constant 0 : i32
    return %c0_i32 : i32
  }
  func.func @transform_1(%arg0: i32) -> (i32, i32) {
    %c0_i32 = arith.constant 0 : i32
    %c0_i32_0 = arith.constant 0 : i32
    return %arg0, %c0_i32 : i32, i32
  }
  func.func @transform_2(%arg0: i32) -> (i32, i32) {
    %c0_i32 = arith.constant 0 : i32
    %c0_i32_0 = arith.constant 0 : i32
    return %arg0, %c0_i32 : i32, i32
  }
}

</mosaic_0001>

<bundles_post_ra>
// kernel: tpu_custom_call.1
= control target key start
LH: loop header
LB: loop body
LE: loop exit
PB: predicated region body
PF: predicated region fallthrough
CT: control target
= control target key end

     0   :  { %8 = vsyncpa [#allocation4], 0  ;;  %s164_s0 = inlined_call_operand.<no memory space> [shape: f32[1], index: 0, kind: input, shape index: {}]   ;;  %s165_s1 = inlined_call_operand.hbm [shape: f32[8,512], index: 1, kind: input, shape index: {}]   ;;  %s166_s2 = inlined_call_operand.hbm [shape: f32[8,512], index: 2, kind: output, shape index: {}]  }
   0x1   :  { %9 = vsyncpa [#allocation5], 0  ;;  %s120_s9 = smov [#allocation3]   ;;  %s72_s13 = scalar_lea.hbm %s165_s1, 512 }
   0x2   :  { %s18_s10 = sshll.u32 %s120_s9, 4  ;;  %p73_p0 = scmp.ne.s32.totalorder %s165_s1, %s72_s13  ;;  %s19_s10 = int_to_ptr.vmem [resolvable:$true] %s18_s10 }
   0x3   :  { %p76_p1 = scmp.lt.u32.totalorder %s72_s13, %s165_s1 }
   0x5   :  { %p78_p2 = pnand %p76_p1, %p73_p0 }
   0x7   :  { %81 = shalt.err (!%p78_p2)
}
   0x8   :  { %s82_s18 = scalar_lea.vmem %s19_s10, 512  ;;  %p87_p4 = scmp.lt.s32.totalorder %s19_s10, %s19_s10 }
   0x9   :  { %p83_p3 = scmp.ne.s32.totalorder %s19_s10, %s82_s18  ;;  %p88_p5 = scmp.lt.s32.totalorder %s82_s18, %s82_s18 }
   0xb   :  { %p89_p6 = por %p88_p5, %p87_p4 }
   0xd   :  { %p90_p7 = pnand %p89_p6, %p83_p3 }
   0xf   :  { %93 = shalt.err (!%p90_p7)
}
  0x10   :  { %21 = dma.hbm_to_vmem [thread:$0]  %s165_s1, 512, %s19_s10, [#allocation4]  }
  0x11   :  { %116 = dma.done.wait [#allocation4], 512  }
  0x12   :  { %117 = vsyncadd [#allocation4], 4294966784  ;;  %v30_v0 = vstv %s164_s0  ;;  %v25_v1 = vld [vmem:[#allocation3] sm:$0xff]  ;;  %v26_v2 = vld [vmem:[#allocation3 + $0x8] sm:$0xff]  ;;  %s121_s1 = smov [#allocation6]  }
  0x13   :  { %v27_v3 = vld [vmem:[#allocation3 + $0x10] sm:$0xff]  ;;  %v31_v4 = vmul.f32 %v30_v0, %v25_v1  ;;  %v32_v5 = vmul.f32 %v30_v0, %v26_v2  ;;  %v28_v7 = vld [vmem:[#allocation3 + $0x18] sm:$0xff]  ;;  %s53_s23 = sshll.u32 %s121_s1, 4  ;;  %s54_s23 = int_to_ptr.vmem [resolvable:$true] %s53_s23 }
  0x14   :  { %v33_v6 = vmul.f32 %v30_v0, %v27_v3  ;;  %v34_v8 = vmul.f32 %v30_v0, %v28_v7  ;;  %s94_s0 = scalar_lea.vmem %s54_s23, 512  ;;  %p99_p9 = scmp.lt.s32.totalorder %s54_s23, %s54_s23 }
  0x15   :  { %v35_v9 = vmul.f32 1.442695, %v31_v4  ;;  %v37_v10 = vmul.f32 1.442695, %v32_v5  ;;  %p95_p8 = scmp.ne.s32.totalorder %s54_s23, %s94_s0  ;;  %p100_p10 = scmp.lt.s32.totalorder %s94_s0, %s94_s0 }
  0x16   :  { %v39_v11 = vmul.f32 1.442695, %v33_v6  ;;  %v41_v12 = vmul.f32 1.442695, %v34_v8 }
  0x17   :  { %64 = vpow2.f32 %v35_v9  ;;  %p101_p11 = por %p100_p10, %p99_p9 }
  0x18   :  { %66 = vpow2.f32 %v37_v10 }
  0x19   :  { %68 = vpow2.f32 %v39_v11  ;;  %p102_p12 = pnand %p101_p11, %p95_p8 }
  0x1a   :  { %70 = vpow2.f32 %v41_v12 }
  0x21   :  { %v65_v13 = vpop.eup %64 }
  0x22   :  { %v67_v14 = vpop.eup %66  ;;  %43 = vst [vmem:[#allocation6] sm:$0xff] %v65_v13 }
  0x23   :  { %v69_v15 = vpop.eup %68  ;;  %44 = vst [vmem:[#allocation6 + $0x8] sm:$0xff] %v67_v14 }
  0x24   :  { %v71_v16 = vpop.eup %70  ;;  %45 = vst [vmem:[#allocation6 + $0x10] sm:$0xff] %v69_v15 }
  0x25   :  { %46 = vst [vmem:[#allocation6 + $0x18] sm:$0xff] %v71_v16 }
  0x26   :  { %105 = shalt.err (!%p102_p12)
}
  0x27   :  { %s106_s26 = scalar_lea.hbm %s166_s2, 512 }
  0x28   :  { %p107_p13 = scmp.ne.s32.totalorder %s166_s2, %s106_s26  ;;  %p110_p0 = scmp.lt.u32.totalorder %s106_s26, %s166_s2 }
  0x2a   :  { %p112_p1 = pnand %p110_p0, %p107_p13 }
  0x2c   :  { %115 = shalt.err (!%p112_p1)
}
  0x2d   :  { %56 = dma.vmem_to_hbm [thread:$0]  %s54_s23, 512, %s166_s2, [#allocation5]  }
  0x2e   :  { %118 = dma.done.wait [#allocation5], 512  }
  0x2f   :  { %119 = vsyncadd [#allocation5], 4294966784 }
  0x30   :  { %60 = vsyncpa [#allocation4], 1 }
  0x31   :  { %61 = vsyncpa [#allocation5], 1 }

</bundles_post_ra>
